<compile_context>
chip_gen: v6e
topology: v6e:2x2x1
jax: 0.10.0
libtpu: 0.0.40
codegen_flags: <defaults>
</compile_context>

<pallas_src>
import jax
import jax.numpy as jnp
from jax.experimental import pallas as pl
from jax.experimental.pallas import tpu as pltpu

H1, H2, H3 = 1024, 256, 64
H3_PAD = 128          # 64-wide hidden layer padded to full lane width
OUT = 2               # real logits
OUT_PAD = 128         # in-register width of the final matmul (MXU-friendly)


def _round_up(n, m):
    return ((n + m - 1) // m) * m


def mlp_kernel(x_ref,
               w1_ref, b1_ref,
               w2_ref, b2_ref,
               w3_ref, b3_ref,
               w4_ref, b4_ref,
               o_ref):
    """One (tm, seq_len) activation tile; all weights VMEM-resident.

    Matmuls run bf16 x bf16 on the MXU with f32 accumulation; bias add and
    ReLU stay in f32 (safe on v5e, which has no bf16 VPU).  Only the first
    OUT columns of the (tm, OUT_PAD) final result are written back to HBM.
    """
    x = x_ref[...]
    if x.dtype != jnp.bfloat16:          # static (trace-time) dtype dispatch
        x = x.astype(jnp.bfloat16)

    h1 = jnp.dot(x, w1_ref[...],
                 preferred_element_type=jnp.float32) + b1_ref[...]
    h1 = jnp.maximum(h1, 0.0)

    h2 = jnp.dot(h1.astype(jnp.bfloat16), w2_ref[...],
                 preferred_element_type=jnp.float32) + b2_ref[...]
    h2 = jnp.maximum(h2, 0.0)

    h3 = jnp.dot(h2.astype(jnp.bfloat16), w3_ref[...],
                 preferred_element_type=jnp.float32) + b3_ref[...]
    h3 = jnp.maximum(h3, 0.0)            # padded cols are ReLU(0) = 0

    out = jnp.dot(h3.astype(jnp.bfloat16), w4_ref[...],
                  preferred_element_type=jnp.float32) + b4_ref[...]
    o_ref[...] = out[:, :OUT].astype(o_ref.dtype)   # narrow store, no HBM pad


def simple_classifier(x, params, *, tm=512):
    """x: (batch, seq_len) float32 or bfloat16 -> (batch, 2) float32 logits."""
    (w1, b1), (w2, b2), (w3, b3), (w4, b4) = params
    batch, seq_len = x.shape

    # --- Row-tile selection -------------------------------------------------
    # Don't pad tiny batches up to the tile; keep tm a multiple of 8.
    tm = _round_up(max(8, min(tm, batch)), 8)
    # v7x megacore: make sure the "parallel" batch axis has >= 2 grid steps
    # when there is enough work to split (irrelevant on 1-TC v5e/v6e).
    if batch >= 256 and _round_up(batch, tm) // tm < 2:
        tm = _round_up(pl.cdiv(batch, 2), 8)
    padded = _round_up(batch, tm)
    if padded != batch:
        x = jnp.pad(x, ((0, padded - batch), (0, 0)))

    # --- Zero-pad the narrow layers (semantics-preserving) ------------------
    w3p = jnp.pad(w3, ((0, 0), (0, H3_PAD - w3.shape[1])))          # (256,128)
    b3p = jnp.pad(b3, ((0, 0), (0, H3_PAD - b3.shape[1])))          # (1,128)
    w4p = jnp.pad(w4, ((0, H3_PAD - w4.shape[0]),                    # (128,128)
                       (0, OUT_PAD - w4.shape[1])))
    b4p = jnp.pad(b4, ((0, 0), (0, OUT_PAD - b4.shape[1])))          # (1,128)

    grid = (padded // tm,)

    def const_map(i):            # weights/biases: same (only) block each step
        return (0, 0)

    def resident(arr):           # full-array, VMEM-resident across the grid
        return pl.BlockSpec(arr.shape, const_map)

    flops = 2 * padded * (seq_len * H1 + H1 * H2 + H2 * H3_PAD + H3_PAD * OUT_PAD)
    bytes_accessed = (
        int(x.size) * x.dtype.itemsize
        + sum(int(a.size) * a.dtype.itemsize
              for a in (w1, b1, w2, b2, w3p, b3p, w4p, b4p))
        + padded * OUT * 4)

    out = pl.pallas_call(
        mlp_kernel,
        out_shape=jax.ShapeDtypeStruct((padded, OUT), jnp.float32),
        grid_spec=pltpu.PrefetchScalarGridSpec(
            num_scalar_prefetch=0,
            grid=grid,
            in_specs=[
                pl.BlockSpec((tm, seq_len), lambda i: (i, 0)),  # x tile streams
                resident(w1), resident(b1),
                resident(w2), resident(b2),
                resident(w3p), resident(b3p),
                resident(w4p), resident(b4p),
            ],
            out_specs=pl.BlockSpec((tm, OUT), lambda i: (i, 0)),
        ),
        compiler_params=pltpu.CompilerParams(
            dimension_semantics=("parallel",),        # second TC on v7x
            vmem_limit_bytes=32 * 1024 * 1024,        # real footprint < 10 MiB
        ),
        cost_estimate=pl.CostEstimate(
            flops=flops, transcendentals=0, bytes_accessed=bytes_accessed),
    )(x, w1, b1, w2, b2, w3p, b3p, w4p, b4p)

    return out[:batch]


def init_params(key, seq_len, *, weight_dtype=jnp.bfloat16):
    """nn.Linear-style init; weights stored as (in, out) in bf16, biases f32."""
    dims = [(seq_len, H1), (H1, H2), (H2, H3), (H3, OUT)]
    params = []
    for i, (fan_in, fan_out) in enumerate(dims):
        kw, kb = jax.random.split(jax.random.fold_in(key, i))
        bound = 1.0 / jnp.sqrt(fan_in)
        w = jax.random.uniform(kw, (fan_in, fan_out), jnp.float32, -bound, bound)
        b = jax.random.uniform(kb, (1, fan_out), jnp.float32, -bound, bound)
        params.append((w.astype(weight_dtype), b.astype(jnp.float32)))
    return params


def reference(x, params):
    """Pure-JAX reference mirroring the kernel's bf16-input / f32-accum math."""
    h = x
    for i, (w, b) in enumerate(params):
        h = jnp.dot(h.astype(jnp.bfloat16).astype(jnp.float32),
                    w.astype(jnp.float32)) + b
        if i < len(params) - 1:
            h = jnp.maximum(h, 0.0)
    return h


if __name__ == "__main__":
    key = jax.random.PRNGKey(0)
    batch, seq_len = 8, 128

    kx, kp = jax.random.split(key)
    x = jax.random.normal(kx, (batch, seq_len), jnp.float32)
    params = init_params(kp, seq_len)

    out = simple_classifier(x, params)
    out = jax.block_until_ready(out)

    ref = reference(x, params)
    assert out.shape == (batch, OUT)
    assert jnp.allclose(out, ref, atol=1e-2, rtol=1e-2), "mismatch vs reference"

    print("KERNEL_OK")
</pallas_src>

<mosaic_0001>
module attributes {stable_mosaic.version = 11 : i64} {
  func.func @mlp_kernel(%arg0: i32, %arg1: memref<8x128xf32, #tpu.memory_space<vmem>>, %arg2: memref<128x1024xbf16, #tpu.memory_space<vmem>>, %arg3: memref<1x1024xf32, #tpu.memory_space<vmem>>, %arg4: memref<1024x256xbf16, #tpu.memory_space<vmem>>, %arg5: memref<1x256xf32, #tpu.memory_space<vmem>>, %arg6: memref<256x128xbf16, #tpu.memory_space<vmem>>, %arg7: memref<1x128xf32, #tpu.memory_space<vmem>>, %arg8: memref<128x128xbf16, #tpu.memory_space<vmem>>, %arg9: memref<1x128xf32, #tpu.memory_space<vmem>>, %arg10: memref<8x2xf32, #tpu.memory_space<vmem>>) attributes {dimension_semantics = [#tpu.dimension_semantics<parallel>], iteration_bounds = array<i64: 1>, scalar_prefetch = 0 : i64, scratch_operands = 0 : i64, tpu.core_type = #tpu.core_type<tc>, window_params = [{transform_indices = @transform_0, window_bounds = array<i64: 8, 128>}, {pipeline_mode = #tpu.pipeline_mode<synchronous>, transform_indices = @transform_1, window_bounds = array<i64: 128, 1024>}, {pipeline_mode = #tpu.pipeline_mode<synchronous>, transform_indices = @transform_2, window_bounds = array<i64: 1, 1024>}, {pipeline_mode = #tpu.pipeline_mode<synchronous>, transform_indices = @transform_3, window_bounds = array<i64: 1024, 256>}, {pipeline_mode = #tpu.pipeline_mode<synchronous>, transform_indices = @transform_4, window_bounds = array<i64: 1, 256>}, {pipeline_mode = #tpu.pipeline_mode<synchronous>, transform_indices = @transform_5, window_bounds = array<i64: 256, 128>}, {pipeline_mode = #tpu.pipeline_mode<synchronous>, transform_indices = @transform_6, window_bounds = array<i64: 1, 128>}, {pipeline_mode = #tpu.pipeline_mode<synchronous>, transform_indices = @transform_7, window_bounds = array<i64: 128, 128>}, {pipeline_mode = #tpu.pipeline_mode<synchronous>, transform_indices = @transform_8, window_bounds = array<i64: 1, 128>}, {transform_indices = @transform_9, window_bounds = array<i64: 8, 2>}]} {
    %c0 = arith.constant 0 : index
    %c0_0 = arith.constant 0 : index
    %0 = vector.load %arg1[%c0, %c0_0] : memref<8x128xf32, #tpu.memory_space<vmem>>, vector<8x128xf32>
    %1 = arith.truncf %0 : vector<8x128xf32> to vector<8x128xbf16>
    %c0_1 = arith.constant 0 : index
    %c0_2 = arith.constant 0 : index
    %2 = vector.load %arg2[%c0_1, %c0_2] : memref<128x1024xbf16, #tpu.memory_space<vmem>>, vector<128x1024xbf16>
    %cst = arith.constant dense<0.000000e+00> : vector<8x1024xf32>
    %3 = tpu.matmul %1, %2, %cst {dimension_numbers = #tpu.dot_dimension_numbers<[1], [0], [0], [1], [0, 0, 1, 1], [], []>} : vector<8x128xbf16>, vector<128x1024xbf16>, vector<8x1024xf32> -> vector<8x1024xf32>
    %c0_3 = arith.constant 0 : index
    %c0_4 = arith.constant 0 : index
    %4 = vector.load %arg3[%c0_3, %c0_4] : memref<1x1024xf32, #tpu.memory_space<vmem>>, vector<1x1024xf32>
    %5 = vector.broadcast %4 : vector<1x1024xf32> to vector<8x1024xf32>
    %6 = arith.addf %3, %5 : vector<8x1024xf32>
    %cst_5 = arith.constant 0.000000e+00 : f32
    %7 = vector.broadcast %cst_5 : f32 to vector<8x1024xf32>
    %8 = arith.maximumf %6, %7 : vector<8x1024xf32>
    %9 = arith.truncf %8 : vector<8x1024xf32> to vector<8x1024xbf16>
    %c0_6 = arith.constant 0 : index
    %c0_7 = arith.constant 0 : index
    %10 = vector.load %arg4[%c0_6, %c0_7] : memref<1024x256xbf16, #tpu.memory_space<vmem>>, vector<1024x256xbf16>
    %cst_8 = arith.constant dense<0.000000e+00> : vector<8x256xf32>
    %11 = tpu.matmul %9, %10, %cst_8 {dimension_numbers = #tpu.dot_dimension_numbers<[1], [0], [0], [1], [0, 0, 1, 1], [], []>} : vector<8x1024xbf16>, vector<1024x256xbf16>, vector<8x256xf32> -> vector<8x256xf32>
    %c0_9 = arith.constant 0 : index
    %c0_10 = arith.constant 0 : index
    %12 = vector.load %arg5[%c0_9, %c0_10] : memref<1x256xf32, #tpu.memory_space<vmem>>, vector<1x256xf32>
    %13 = vector.broadcast %12 : vector<1x256xf32> to vector<8x256xf32>
    %14 = arith.addf %11, %13 : vector<8x256xf32>
    %cst_11 = arith.constant 0.000000e+00 : f32
    %15 = vector.broadcast %cst_11 : f32 to vector<8x256xf32>
    %16 = arith.maximumf %14, %15 : vector<8x256xf32>
    %17 = arith.truncf %16 : vector<8x256xf32> to vector<8x256xbf16>
    %c0_12 = arith.constant 0 : index
    %c0_13 = arith.constant 0 : index
    %18 = vector.load %arg6[%c0_12, %c0_13] : memref<256x128xbf16, #tpu.memory_space<vmem>>, vector<256x128xbf16>
    %cst_14 = arith.constant dense<0.000000e+00> : vector<8x128xf32>
    %19 = tpu.matmul %17, %18, %cst_14 {dimension_numbers = #tpu.dot_dimension_numbers<[1], [0], [0], [1], [0, 0, 1, 1], [], []>} : vector<8x256xbf16>, vector<256x128xbf16>, vector<8x128xf32> -> vector<8x128xf32>
    %c0_15 = arith.constant 0 : index
    %c0_16 = arith.constant 0 : index
    %20 = vector.load %arg7[%c0_15, %c0_16] : memref<1x128xf32, #tpu.memory_space<vmem>>, vector<1x128xf32>
    %21 = vector.broadcast %20 : vector<1x128xf32> to vector<8x128xf32>
    %22 = arith.addf %19, %21 : vector<8x128xf32>
    %cst_17 = arith.constant 0.000000e+00 : f32
    %23 = vector.broadcast %cst_17 : f32 to vector<8x128xf32>
    %24 = arith.maximumf %22, %23 : vector<8x128xf32>
    %25 = arith.truncf %24 : vector<8x128xf32> to vector<8x128xbf16>
    %c0_18 = arith.constant 0 : index
    %c0_19 = arith.constant 0 : index
    %26 = vector.load %arg8[%c0_18, %c0_19] : memref<128x128xbf16, #tpu.memory_space<vmem>>, vector<128x128xbf16>
    %cst_20 = arith.constant dense<0.000000e+00> : vector<8x128xf32>
    %27 = tpu.matmul %25, %26, %cst_20 {dimension_numbers = #tpu.dot_dimension_numbers<[1], [0], [0], [1], [0, 0, 1, 1], [], []>} : vector<8x128xbf16>, vector<128x128xbf16>, vector<8x128xf32> -> vector<8x128xf32>
    %c0_21 = arith.constant 0 : index
    %c0_22 = arith.constant 0 : index
    %28 = vector.load %arg9[%c0_21, %c0_22] : memref<1x128xf32, #tpu.memory_space<vmem>>, vector<1x128xf32>
    %29 = vector.broadcast %28 : vector<1x128xf32> to vector<8x128xf32>
    %30 = arith.addf %27, %29 : vector<8x128xf32>
    %31 = vector.extract_strided_slice %30 {offsets = [0, 0], sizes = [8, 2], strides = [1, 1]} : vector<8x128xf32> to vector<8x2xf32>
    %c0_23 = arith.constant 0 : index
    %c0_24 = arith.constant 0 : index
    %32 = vector.load %arg10[%c0_23, %c0_24] : memref<8x2xf32, #tpu.memory_space<vmem>>, vector<8x2xf32>
    tpu.vector_store %arg10[%c0_23, %c0_24], %31 {strides = array<i32>} : memref<8x2xf32, #tpu.memory_space<vmem>>, vector<8x2xf32>,
    return
  }
  func.func @transform_0(%arg0: i32) -> (i32, i32) {
    %c0_i32 = arith.constant 0 : i32
    %c0_i32_0 = arith.constant 0 : i32
    return %arg0, %c0_i32 : i32, i32
  }
  func.func @transform_1(%arg0: i32) -> (i32, i32) {
    %c0_i32 = arith.constant 0 : i32
    %c0_i32_0 = arith.constant 0 : i32
    %c0_i32_1 = arith.constant 0 : i32
    return %c0_i32, %c0_i32_0 : i32, i32
  }
  func.func @transform_2(%arg0: i32) -> (i32, i32) {
    %c0_i32 = arith.constant 0 : i32
    %c0_i32_0 = arith.constant 0 : i32
    %c0_i32_1 = arith.constant 0 : i32
    return %c0_i32, %c0_i32_0 : i32, i32
  }
  func.func @transform_3(%arg0: i32) -> (i32, i32) {
    %c0_i32 = arith.constant 0 : i32
    %c0_i32_0 = arith.constant 0 : i32
    %c0_i32_1 = arith.constant 0 : i32
    return %c0_i32, %c0_i32_0 : i32, i32
  }
  func.func @transform_4(%arg0: i32) -> (i32, i32) {
    %c0_i32 = arith.constant 0 : i32
    %c0_i32_0 = arith.constant 0 : i32
    %c0_i32_1 = arith.constant 0 : i32
    return %c0_i32, %c0_i32_0 : i32, i32
  }
  func.func @transform_5(%arg0: i32) -> (i32, i32) {
    %c0_i32 = arith.constant 0 : i32
    %c0_i32_0 = arith.constant 0 : i32
    %c0_i32_1 = arith.constant 0 : i32
    return %c0_i32, %c0_i32_0 : i32, i32
  }
  func.func @transform_6(%arg0: i32) -> (i32, i32) {
    %c0_i32 = arith.constant 0 : i32
    %c0_i32_0 = arith.constant 0 : i32
    %c0_i32_1 = arith.constant 0 : i32
    return %c0_i32, %c0_i32_0 : i32, i32
  }
  func.func @transform_7(%arg0: i32) -> (i32, i32) {
    %c0_i32 = arith.constant 0 : i32
    %c0_i32_0 = arith.constant 0 : i32
    %c0_i32_1 = arith.constant 0 : i32
    return %c0_i32, %c0_i32_0 : i32, i32
  }
  func.func @transform_8(%arg0: i32) -> (i32, i32) {
    %c0_i32 = arith.constant 0 : i32
    %c0_i32_0 = arith.constant 0 : i32
    %c0_i32_1 = arith.constant 0 : i32
    return %c0_i32, %c0_i32_0 : i32, i32
  }
  func.func @transform_9(%arg0: i32) -> (i32, i32) {
    %c0_i32 = arith.constant 0 : i32
    %c0_i32_0 = arith.constant 0 : i32
    return %arg0, %c0_i32 : i32, i32
  }
}

</mosaic_0001>

<bundles_post_ra>
// kernel: tpu_custom_call.1
= control target key start
LH: loop header
LB: loop body
LE: loop exit
PB: predicated region body
PF: predicated region fallthrough
CT: control target
= control target key end

     0   :  { %14 = vsyncpa [#allocation3], 0  ;;  %s2732_s0 = inlined_call_operand.hbm [shape: f32[8,128], index: 0, kind: input, shape index: {}]   ;;  %s2733_s1 = inlined_call_operand.hbm [shape: bf16[128,1024], index: 1, kind: input, shape index: {}]   ;;  %s2734_s2 = inlined_call_operand.hbm [shape: f32[1,1024], index: 2, kind: input, shape index: {}]   ;;  %s2735_s3 = inlined_call_operand.hbm [shape: bf16[1024,256], index: 3, kind: input, shape index: {}]   ;;  %s2736_s4 = inlined_call_operand.vmem [shape: f32[1,256], index: 4, kind: input, shape index: {}]   ;;  %s2737_s5 = inlined_call_operand.hbm [shape: bf16[256,128], index: 5, kind: input, shape index: {}]   ;;  %s2738_s6 = inlined_call_operand.vmem [shape: f32[1,128], index: 6, kind: input, shape index: {}]   ;;  %s2739_s7 = inlined_call_operand.hbm [shape: bf16[128,128], index: 7, kind: input, shape index: {}]   ;;  %s2740_s8 = inlined_call_operand.vmem [shape: f32[1,128], index: 8, kind: input, shape index: {}]   ;;  %s2741_s9 = inlined_call_operand.vmem [shape: f32[8,2], index: 9, kind: output, shape index: {}]  }
   0x1   :  { %15 = vsyncpa [#allocation5], 0 }
   0x2   :  { %16 = vsyncpa [#allocation8], 0 }
   0x3   :  { %17 = vsyncpa [#allocation11], 0  ;;  %s2593_s30 = smov [#allocation4]  }
   0x4   :  { %s33_s10 = sshll.u32 %s2593_s30, 4  ;;  %s34_s10 = int_to_ptr.vmem [resolvable:$true] %s33_s10 }
   0x5   :  { %s2473_s11 = scalar_lea.vmem %s34_s10, 8192  ;;  %p2478_p1 = scmp.lt.s32.totalorder %s34_s10, %s34_s10 }
   0x6   :  { %p2474_p0 = scmp.ne.s32.totalorder %s34_s10, %s2473_s11  ;;  %p2479_p2 = scmp.lt.s32.totalorder %s2473_s11, %s2473_s11 }
   0x8   :  { %p2480_p3 = por %p2479_p2, %p2478_p1 }
   0xa   :  { %p2481_p4 = pnand %p2480_p3, %p2474_p0 }
   0xc   :  { %2484 = shalt.err (!%p2481_p4)
}
   0xd   :  { %s2594_s12 = smov 512   ;;  %s2595_s13 = smov 32  }
   0xe   :  { %39 = dma.hbm_to_vmem [thread:$0]  %s2733_s1, 8192, %s34_s10, [#allocation5], %s2594_s12, %s2594_s12, %s2595_s13  }
   0xf   :  { %s2596_s16 = smov [#allocation7]  }
  0x10   :  { %s55_s17 = sshll.u32 %s2596_s16, 4  ;;  %s56_s17 = int_to_ptr.vmem [resolvable:$true] %s55_s17 }
  0x11   :  { %s2493_s18 = scalar_lea.vmem %s56_s17, 16384  ;;  %p2498_p6 = scmp.lt.s32.totalorder %s56_s17, %s56_s17 }
  0x12   :  { %p2494_p5 = scmp.ne.s32.totalorder %s56_s17, %s2493_s18  ;;  %p2499_p7 = scmp.lt.s32.totalorder %s2493_s18, %s2493_s18 }
  0x14   :  { %p2500_p8 = por %p2499_p7, %p2498_p6 }
  0x16   :  { %p2501_p9 = pnand %p2500_p8, %p2494_p5 }
  0x18   :  { %2504 = shalt.err (!%p2501_p9)
}
  0x19   :  { %s2597_s19 = smov 128   ;;  %s2598_s20 = smov 8  }
  0x1a   :  { %61 = dma.hbm_to_vmem [thread:$0]  %s2735_s3, 16384, %s56_s17, [#allocation8], %s2597_s19, %s2597_s19, %s2598_s20  }
  0x1b   :  { %s2599_s23 = smov [#allocation2]   ;;  %s2600_s25 = smov [#allocation6]  }
  0x1c   :  { %s24_s24 = sshll.u32 %s2599_s23, 4  ;;  %s46_s1 = sshll.u32 %s2600_s25, 4  ;;  %s25_s24 = int_to_ptr.vmem [resolvable:$true] %s24_s24  ;;  %s47_s1 = int_to_ptr.vmem [resolvable:$true] %s46_s1 }
  0x1d   :  { %s2513_s26 = scalar_lea.vmem %s25_s24, 128  ;;  %p2518_p11 = scmp.lt.s32.totalorder %s25_s24, %s25_s24 }
  0x1e   :  { %p2514_p10 = scmp.ne.s32.totalorder %s25_s24, %s2513_s26  ;;  %p2519_p12 = scmp.lt.s32.totalorder %s2513_s26, %s2513_s26 }
  0x20   :  { %p2520_p13 = por %p2519_p12, %p2518_p11 }
  0x22   :  { %p2521_p0 = pnand %p2520_p13, %p2514_p10 }
  0x24   :  { %2524 = shalt.err (!%p2521_p0)
}
  0x25   :  { %27 = dma.hbm_to_vmem [thread:$0]  %s2732_s0, 128, %s25_s24, [#allocation3]  }
  0x26   :  { %s2533_s29 = scalar_lea.vmem %s47_s1, 128  ;;  %p2538_p2 = scmp.lt.s32.totalorder %s47_s1, %s47_s1 }
  0x27   :  { %p2534_p1 = scmp.ne.s32.totalorder %s47_s1, %s2533_s29  ;;  %p2539_p3 = scmp.lt.s32.totalorder %s2533_s29, %s2533_s29 }
  0x29   :  { %p2540_p4 = por %p2539_p3, %p2538_p2 }
  0x2b   :  { %p2541_p5 = pnand %p2540_p4, %p2534_p1 }
  0x2d   :  { %2544 = shalt.err (!%p2541_p5)
}
  0x2e   :  { %49 = dma.hbm_to_vmem [thread:$0]  %s2734_s2, 128, %s47_s1, [#allocation5]  }
  0x2f   :  { %s2601_s10 = smov [#allocation9]  }
  0x30   :  { %s69_s11 = sshll.u32 %s2601_s10, 4  ;;  %s70_s11 = int_to_ptr.vmem [resolvable:$true] %s69_s11 }
  0x31   :  { %s2553_s12 = scalar_lea.vmem %s70_s11, 2048  ;;  %p2558_p7 = scmp.lt.s32.totalorder %s70_s11, %s70_s11 }
  0x32   :  { %p2554_p6 = scmp.ne.s32.totalorder %s70_s11, %s2553_s12  ;;  %p2559_p8 = scmp.lt.s32.totalorder %s2553_s12, %s2553_s12 }
  0x34   :  { %p2560_p9 = por %p2559_p8, %p2558_p7 }
  0x36   :  { %p2561_p10 = pnand %p2560_p9, %p2554_p6 }
  0x38   :  { %2564 = shalt.err (!%p2561_p10)
}
  0x39   :  { %s2602_s0 = smov 64   ;;  %s2603_s13 = smov 4  }
  0x3a   :  { %75 = dma.hbm_to_vmem [thread:$0]  %s2737_s5, 2048, %s70_s11, [#allocation8], %s2602_s0, %s2602_s0, %s2603_s13  }
  0x3b   :  { %s2604_s16 = smov [#allocation10]  }
  0x3c   :  { %s83_s17 = sshll.u32 %s2604_s16, 4  ;;  %s84_s17 = int_to_ptr.vmem [resolvable:$true] %s83_s17 }
  0x3d   :  { %s2573_s2 = scalar_lea.vmem %s84_s17, 1024  ;;  %p2578_p12 = scmp.lt.s32.totalorder %s84_s17, %s84_s17 }
  0x3e   :  { %p2574_p11 = scmp.ne.s32.totalorder %s84_s17, %s2573_s2  ;;  %p2579_p13 = scmp.lt.s32.totalorder %s2573_s2, %s2573_s2 }
  0x40   :  { %p2580_p0 = por %p2579_p13, %p2578_p12 }
  0x42   :  { %p2581_p1 = pnand %p2580_p0, %p2574_p11 }
  0x44   :  { %2584 = shalt.err (!%p2581_p1)
}
  0x45   :  { %89 = dma.hbm_to_vmem [thread:$0]  %s2739_s7, 1024, %s84_s17, [#allocation11], %s2602_s0, %s2602_s0, %s2603_s13  }
  0x46   :  { %2585 = dma.done.wait [#allocation3], 128  }
  0x47   :  { %2586 = vsyncadd [#allocation3], 4294967168 }
  0x48   :  { %2587 = dma.done.wait [#allocation5], 8320  }
  0x49   :  { %2588 = vsyncadd [#allocation5], 4294958976 }
  0x4a   :  { %2589 = dma.done.wait [#allocation8], 18432  }
  0x4b   :  { %2590 = vsyncadd [#allocation8], 4294948864 }
  0x4c   :  { %2591 = dma.done.wait [#allocation11], 1024  }
  0x4d   :  { %2592 = vsyncadd [#allocation11], 4294966272  ;;  %v2605_v0 = vmov 0   ;;  %v169_v1 = vld [vmem:[#allocation4 + $0x1c0] sm:$0xff]  ;;  %v170_v3 = vld [vmem:[#allocation4 + $0x1c8] sm:$0xff]  ;;  %vm2607_vm0 = vmmov 0  }
  0x4e   :  { %571 = vmatprep.mubr.bf16.mxu0 %v2605_v0  ;;  %612 = vmatprep.mubr.bf16.mxu1 %v2605_v0  ;;  %v173_v2 = vld [vmem:[#allocation4 + $0x1e0] sm:$0xff]  ;;  %v174_v5 = vld [vmem:[#allocation4 + $0x1e8] sm:$0xff]  ;;  %v171_v62 = vld [vmem:[#allocation4 + $0x1d0] sm:$0xff]  ;;  %vm1955_vm1 = vcmask 15360  }
  0x4f   :  { %v2022_v4 = vcombine.high %v169_v1, %v173_v2  ;;  %v2021_v6 = vcombine.low %v169_v1, %v173_v2  ;;  %v161_v7 = vld [vmem:[#allocation4 + $0x180] sm:$0xff]  ;;  %v2024_v9 = vcombine.high %v170_v3, %v174_v5  ;;  %v2023_v10 = vcombine.low %v170_v3, %v174_v5  ;;  %v162_v12 = vld [vmem:[#allocation4 + $0x188] sm:$0xff]  ;;  %v175_v1 = vld [vmem:[#allocation4 + $0x1f0] sm:$0xff] }
  0x50   :  { %v165_v8 = vld [vmem:[#allocation4 + $0x1a0] sm:$0xff]  ;;  %v166_v13 = vld [vmem:[#allocation4 + $0x1a8] sm:$0xff]  ;;  %v172_v2 = vld [vmem:[#allocation4 + $0x1d8] sm:$0xff] }
  0x51   :  { %v2014_v11 = vcombine.high %v161_v7, %v165_v8  ;;  %v153_v14 = vld [vmem:[#allocation4 + $0x140] sm:$0xff]  ;;  %539 = vmatprep.subr.bf16.mxu0 %v2022_v4  ;;  %v2016_v15 = vcombine.high %v162_v12, %v166_v13  ;;  %v154_v17 = vld [vmem:[#allocation4 + $0x148] sm:$0xff]  ;;  %580 = vmatprep.subr.bf16.mxu1 %v2024_v9  ;;  %v2013_v19 = vcombine.low %v161_v7, %v165_v8  ;;  %v176_v3 = vld [vmem:[#allocation4 + $0x1f8] sm:$0xff] }
  0x52   :  { %v157_v16 = vld [vmem:[#allocation4 + $0x160] sm:$0xff]  ;;  %v158_v18 = vld [vmem:[#allocation4 + $0x168] sm:$0xff]  ;;  %540 = vmatpush1.bf16.msra.mxu0 %v2021_v6  ;;  %581 = vmatpush1.bf16.msra.mxu1 %v2023_v10  ;;  %v2015_v20 = vcombine.low %v162_v12, %v166_v13  ;;  %v111_v5 = vld [vmem:[#allocation2] sm:$0xff]  ;;  %v2026_v7 = vcombine.high %v171_v62, %v175_v1  ;;  %v2028_v9 = vcombine.high %v172_v2, %v176_v3 }
  0x53   :  { %541 = vmatprep.subr.bf16.mxu0 %v2014_v11  ;;  %v2006_v21 = vcombine.high %v153_v14, %v157_v16  ;;  %582 = vmatprep.subr.bf16.mxu1 %v2016_v15  ;;  %v2008_v22 = vcombine.high %v154_v17, %v158_v18  ;;  %v145_v23 = vld [vmem:[#allocation4 + $0x100] sm:$0xff]  ;;  %v146_v25 = vld [vmem:[#allocation4 + $0x108] sm:$0xff]  ;;  %v2005_v27 = vcombine.low %v153_v14, %v157_v16  ;;  %v163_v8 = vld [vmem:[#allocation4 + $0x190] sm:$0xff] }
  0x54   :  { %v149_v24 = vld [vmem:[#allocation4 + $0x120] sm:$0xff]  ;;  %v150_v26 = vld [vmem:[#allocation4 + $0x128] sm:$0xff]  ;;  %v2007_v28 = vcombine.low %v154_v17, %v158_v18  ;;  %v167_v10 = vld [vmem:[#allocation4 + $0x1b0] sm:$0xff]  ;;  %v2678_v12 = vpack.c.bf16 %v111_v5, %v111_v5  ;;  %v2025_v14 = vcombine.low %v171_v62, %v175_v1  ;;  %v2027_v15 = vcombine.low %v172_v2, %v176_v3 }
  0x55   :  { %v1998_v29 = vcombine.high %v145_v23, %v149_v24  ;;  %v2000_v30 = vcombine.high %v146_v25, %v150_v26  ;;  %v137_v31 = vld [vmem:[#allocation4 + $0xc0] sm:$0xff]  ;;  %v138_v33 = vld [vmem:[#allocation4 + $0xc8] sm:$0xff]  ;;  %v1997_v35 = vcombine.low %v145_v23, %v149_v24  ;;  %v1999_v36 = vcombine.low %v146_v25, %v150_v26  ;;  %v164_v11 = vld [vmem:[#allocation4 + $0x198] sm:$0xff] }
  0x56   :  { %542 = vmatpush1.bf16.msra.mxu0 %v2013_v19  ;;  %583 = vmatpush1.bf16.msra.mxu1 %v2015_v20  ;;  %v141_v32 = vld [vmem:[#allocation4 + $0xe0] sm:$0xff]  ;;  %v142_v34 = vld [vmem:[#allocation4 + $0xe8] sm:$0xff]  ;;  %v168_v13 = vld [vmem:[#allocation4 + $0x1b8] sm:$0xff]  ;;  %v2018_v16 = vcombine.high %v163_v8, %v167_v10 }
  0x57   :  { %543 = vmatprep.subr.bf16.mxu0 %v2006_v21  ;;  %584 = vmatprep.subr.bf16.mxu1 %v2008_v22  ;;  %v1990_v37 = vcombine.high %v137_v31, %v141_v32  ;;  %v1992_v38 = vcombine.high %v138_v33, %v142_v34  ;;  %v129_v39 = vld [vmem:[#allocation4 + $0x80] sm:$0xff]  ;;  %v130_v41 = vld [vmem:[#allocation4 + $0x88] sm:$0xff]  ;;  %v1989_v43 = vcombine.low %v137_v31, %v141_v32  ;;  %v155_v17 = vld [vmem:[#allocation4 + $0x150] sm:$0xff] }
  0x58   :  { %v133_v40 = vld [vmem:[#allocation4 + $0xa0] sm:$0xff]  ;;  %v134_v42 = vld [vmem:[#allocation4 + $0xa8] sm:$0xff]  ;;  %v1991_v44 = vcombine.low %v138_v33, %v142_v34  ;;  %v2020_v18 = vcombine.high %v164_v11, %v168_v13  ;;  %v159_v19 = vld [vmem:[#allocation4 + $0x170] sm:$0xff]  ;;  %v2017_v22 = vcombine.low %v163_v8, %v167_v10  ;;  %v2019_v23 = vcombine.low %v164_v11, %v168_v13 }
  0x59   :  { %v1982_v45 = vcombine.high %v129_v39, %v133_v40  ;;  %v1984_v46 = vcombine.high %v130_v41, %v134_v42  ;;  %v121_v47 = vld [vmem:[#allocation4 + $0x40] sm:$0xff]  ;;  %v122_v49 = vld [vmem:[#allocation4 + $0x48] sm:$0xff]  ;;  %v1981_v51 = vcombine.low %v129_v39, %v133_v40  ;;  %v1983_v52 = vcombine.low %v130_v41, %v134_v42  ;;  %v156_v20 = vld [vmem:[#allocation4 + $0x158] sm:$0xff] }
  0x5a   :  { %544 = vmatpush1.bf16.msra.mxu0 %v2005_v27  ;;  %585 = vmatpush1.bf16.msra.mxu1 %v2007_v28  ;;  %v125_v48 = vld [vmem:[#allocation4 + $0x60] sm:$0xff]  ;;  %v126_v50 = vld [vmem:[#allocation4 + $0x68] sm:$0xff]  ;;  %v160_v21 = vld [vmem:[#allocation4 + $0x178] sm:$0xff]  ;;  %v2010_v24 = vcombine.high %v155_v17, %v159_v19 }
  0x5b   :  { %545 = vmatprep.subr.bf16.mxu0 %v1998_v29  ;;  %586 = vmatprep.subr.bf16.mxu1 %v2000_v30  ;;  %v1974_v53 = vcombine.high %v121_v47, %v125_v48  ;;  %v113_v54 = vld [vmem:[#allocation4] sm:$0xff]  ;;  %v1976_v55 = vcombine.high %v122_v49, %v126_v50  ;;  %v114_v57 = vld [vmem:[#allocation4 + $0x8] sm:$0xff]  ;;  %v1973_v59 = vcombine.low %v121_v47, %v125_v48  ;;  %v147_v25 = vld [vmem:[#allocation4 + $0x110] sm:$0xff] }
  0x5c   :  { %v117_v56 = vld [vmem:[#allocation4 + $0x20] sm:$0xff]  ;;  %v118_v58 = vld [vmem:[#allocation4 + $0x28] sm:$0xff]  ;;  %v1975_v60 = vcombine.low %v122_v49, %v126_v50  ;;  %v2012_v26 = vcombine.high %v156_v20, %v160_v21  ;;  %v151_v27 = vld [vmem:[#allocation4 + $0x130] sm:$0xff]  ;;  %v2009_v30 = vcombine.low %v155_v17, %v159_v19  ;;  %v2011_v31 = vcombine.low %v156_v20, %v160_v21 }
  0x5d   :  { %v1966_v61 = vcombine.high %v113_v54, %v117_v56  ;;  %v1968_v63 = vcombine.high %v114_v57, %v118_v58  ;;  %v1965_v4 = vcombine.low %v113_v54, %v117_v56  ;;  %v1967_v6 = vcombine.low %v114_v57, %v118_v58  ;;  %v148_v28 = vld [vmem:[#allocation4 + $0x118] sm:$0xff]  ;;  %v139_v33 = vld [vmem:[#allocation4 + $0xd0] sm:$0xff] }
  0x5e   :  { %546 = vmatpush1.bf16.msra.mxu0 %v1997_v35  ;;  %587 = vmatpush1.bf16.msra.mxu1 %v1999_v36  ;;  %v152_v29 = vld [vmem:[#allocation4 + $0x138] sm:$0xff]  ;;  %v2002_v32 = vcombine.high %v147_v25, %v151_v27  ;;  %v143_v35 = vld [vmem:[#allocation4 + $0xf0] sm:$0xff] }
  0x5f   :  { %547 = vmatprep.subr.bf16.mxu0 %v1990_v37  ;;  %588 = vmatprep.subr.bf16.mxu1 %v1992_v38  ;;  %v2004_v34 = vcombine.high %v148_v28, %v152_v29  ;;  %v140_v36 = vld [vmem:[#allocation4 + $0xd8] sm:$0xff]  ;;  %v2001_v38 = vcombine.low %v147_v25, %v151_v27  ;;  %v2003_v39 = vcombine.low %v148_v28, %v152_v29  ;;  %v131_v41 = vld [vmem:[#allocation4 + $0x90] sm:$0xff] }
  0x60   :  { %v144_v37 = vld [vmem:[#allocation4 + $0xf8] sm:$0xff]  ;;  %v1994_v40 = vcombine.high %v139_v33, %v143_v35  ;;  %v135_v42 = vld [vmem:[#allocation4 + $0xb0] sm:$0xff] }
  0x61   :  { %v1986_v47 = vcombine.high %v131_v41, %v135_v42  ;;  %v123_v48 = vld [vmem:[#allocation4 + $0x50] sm:$0xff]  ;;  %v2251_v2 = vld [vmem:[#allocation7 + $0x74] ss:$8 sps:$4 sm:$0xff]  }
  0x62   :  { %548 = vmatpush1.bf16.msra.mxu0 %v1989_v43  ;;  %589 = vmatpush1.bf16.msra.mxu1 %v1991_v44  ;;  %v132_v43 = vld [vmem:[#allocation4 + $0x98] sm:$0xff]  ;;  %v127_v50 = vld [vmem:[#allocation4 + $0x70] sm:$0xff] }
  0x63   :  { %549 = vmatprep.subr.bf16.mxu0 %v1982_v45  ;;  %590 = vmatprep.subr.bf16.mxu1 %v1984_v46  ;;  %v136_v44 = vld [vmem:[#allocation4 + $0xb8] sm:$0xff]  ;;  %v1993_v45 = vcombine.low %v139_v33, %v143_v35  ;;  %v1995_v46 = vcombine.low %v140_v36, %v144_v37  ;;  %v115_v56 = vld [vmem:[#allocation4 + $0x10] sm:$0xff] }
  0x64   :  { %v1988_v49 = vcombine.high %v132_v43, %v136_v44  ;;  %v1987_v54 = vcombine.low %v132_v43, %v136_v44  ;;  %v119_v58 = vld [vmem:[#allocation4 + $0x30] sm:$0xff]  ;;  %v2263_v13 = vld [vmem:[#allocation7 + $0x54] ss:$8 sps:$4 sm:$0xff]  }
  0x65   :  { %v1969_v3 = vcombine.low %v115_v56, %v119_v58  ;;  %v2257_v8 = vld [vmem:[#allocation7 + $0x64] ss:$8 sps:$4 sm:$0xff]   ;;  %v2255_v10 = vld [vmem:[#allocation7 + $0x60] ss:$8 sps:$4 sm:$0xff]   ;;  %v2275_v21 = vld [vmem:[#allocation7 + $0x34] ss:$8 sps:$4 sm:$0xff]  }
  0x66   :  { %550 = vmatpush1.bf16.msra.mxu0 %v1981_v51  ;;  %591 = vmatpush1.bf16.msra.mxu1 %v1983_v52  ;;  %v124_v51 = vld [vmem:[#allocation4 + $0x58] sm:$0xff]  ;;  %v2258_v11 = vld [vmem:[#allocation7 + $0x160] ss:$8 sps:$4 sm:$0xff]   ;;  %v2269_v17 = vld [vmem:[#allocation7 + $0x44] ss:$8 sps:$4 sm:$0xff]  }
  0x67   :  { %551 = vmatprep.subr.bf16.mxu0 %v1974_v53  ;;  %592 = vmatprep.subr.bf16.mxu1 %v1976_v55  ;;  %v128_v52 = vld [vmem:[#allocation4 + $0x78] sm:$0xff]  ;;  %v1985_v53 = vcombine.low %v131_v41, %v135_v42  ;;  %v1978_v55 = vcombine.high %v123_v48, %v127_v50  ;;  %v2267_v19 = vld [vmem:[#allocation7 + $0x40] ss:$8 sps:$4 sm:$0xff]   ;;  %v2284_v25 = vld [vmem:[#allocation7 + $0x124] ss:$8 sps:$4 sm:$0xff]  }
  0x68   :  { %v1980_v57 = vcombine.high %v124_v51, %v128_v52  ;;  %v1979_v62 = vcombine.low %v124_v51, %v128_v52  ;;  %v2270_v20 = vld [vmem:[#allocation7 + $0x140] ss:$8 sps:$4 sm:$0xff]   ;;  %v2287_v28 = vld [vmem:[#allocation7 + $0x14] ss:$8 sps:$4 sm:$0xff]   ;;  %v2296_v33 = vld [vmem:[#allocation7 + $0x104] ss:$8 sps:$4 sm:$0xff]  }
  0x69   :  { %v2282_v27 = vld [vmem:[#allocation7 + $0x120] ss:$8 sps:$4 sm:$0xff]   ;;  %v2290_v29 = vld [vmem:[#allocation7 + $0x114] ss:$8 sps:$4 sm:$0xff]   ;;  %v2308_v41 = vld [vmem:[#allocation7 + $0x1e4] ss:$8 sps:$4 sm:$0xff]  }
  0x6a   :  { %552 = vmatpush1.bf16.msra.mxu0 %v1973_v59  ;;  %593 = vmatpush1.bf16.msra.mxu1 %v1975_v60  ;;  %v116_v59 = vld [vmem:[#allocation4 + $0x18] sm:$0xff]  ;;  %v2294_v35 = vld [vmem:[#allocation7 + $0x100] ss:$8 sps:$4 sm:$0xff]  }
  0x6b   :  { %553 = vmatprep.subr.bf16.mxu0 %v1966_v61  ;;  %594 = vmatprep.subr.bf16.mxu1 %v1968_v63  ;;  %v120_v60 = vld [vmem:[#allocation4 + $0x38] sm:$0xff]  ;;  %v1977_v61 = vcombine.low %v123_v48, %v127_v50  ;;  %v1970_v63 = vcombine.high %v115_v56, %v119_v58  ;;  %v2306_v42 = vld [vmem:[#allocation7 + $0x1e0] ss:$8 sps:$4 sm:$0xff]   ;;  %v2320_v48 = vld [vmem:[#allocation7 + $0x1c4] ss:$8 sps:$4 sm:$0xff]  }
  0x6c   :  { %v1972_v1 = vcombine.high %v116_v59, %v120_v60  ;;  %v1971_v5 = vcombine.low %v116_v59, %v120_v60  ;;  %v2311_v43 = vld [vmem:[#allocation7 + $0xd4] ss:$8 sps:$4 sm:$0xff]   ;;  %v2318_v50 = vld [vmem:[#allocation7 + $0x1c0] ss:$8 sps:$4 sm:$0xff]   ;;  %v2332_v56 = vld [vmem:[#allocation7 + $0x1a4] ss:$8 sps:$4 sm:$0xff]  }
  0x6d   :  { %v2314_v44 = vld [vmem:[#allocation7 + $0x1d4] ss:$8 sps:$4 sm:$0xff]   ;;  %v2330_v58 = vld [vmem:[#allocation7 + $0x1a0] ss:$8 sps:$4 sm:$0xff]  }
  0x6e   :  { %554 = vmatpush1.bf16.msra.mxu0 %v1965_v4  ;;  %595 = vmatpush1.bf16.msra.mxu1 %v1967_v6  ;;  %v2254_v4 = vld [vmem:[#allocation7 + $0x174] ss:$8 sps:$4 sm:$0xff]   ;;  %v2249_v6 = vld [vmem:[#allocation7 + $0x70] ss:$8 sps:$4 sm:$0xff]  }
  0x6f   :  { %621 = vmatprep.subr.bf16.mxu0 %v2026_v7  ;;  %662 = vmatprep.subr.bf16.mxu1 %v2028_v9  ;;  %v2252_v7 = vld [vmem:[#allocation7 + $0x170] ss:$8 sps:$4 sm:$0xff]   ;;  %v2260_v9 = vld [vmem:[#allocation7 + $0x164] ss:$8 sps:$4 sm:$0xff]   ;;  %v2323_v51 = vld [vmem:[#allocation7 + $0xb4] ss:$8 sps:$4 sm:$0xff]  }
  0x70   :  { %v2326_v52 = vld [vmem:[#allocation7 + $0x1b4] ss:$8 sps:$4 sm:$0xff]  }
  0x71   :  { %572 = vmatmul.mubr.bf16.vlgmr.msra.gmra.mxu0 %v2678_v12  ;;  %613 = vmatmul.mubr.bf16.vlgmr.msra.gmra.mxu1 %v2678_v12  ;;  %v2335_v59 = vld [vmem:[#allocation7 + $0x94] ss:$8 sps:$4 sm:$0xff]  }
  0x72   :  { %622 = vmatpush1.bf16.msra.mxu0 %v2025_v14  ;;  %663 = vmatpush1.bf16.msra.mxu1 %v2027_v15  ;;  %v2266_v14 = vld [vmem:[#allocation7 + $0x154] ss:$8 sps:$4 sm:$0xff]   ;;  %v2261_v15 = vld [vmem:[#allocation7 + $0x50] ss:$8 sps:$4 sm:$0xff]  }
  0x73   :  { %623 = vmatprep.subr.bf16.mxu0 %v2018_v16  ;;  %664 = vmatprep.subr.bf16.mxu1 %v2020_v18  ;;  %v2264_v16 = vld [vmem:[#allocation7 + $0x150] ss:$8 sps:$4 sm:$0xff]   ;;  %v2272_v18 = vld [vmem:[#allocation7 + $0x144] ss:$8 sps:$4 sm:$0xff]   ;;  %v2338_v60 = vld [vmem:[#allocation7 + $0x194] ss:$8 sps:$4 sm:$0xff]  }
  0x74   :  { %653 = vmatprep.mubr.bf16.mxu0 %v2605_v0  ;;  %694 = vmatprep.mubr.bf16.mxu1 %v2605_v0  ;;  %v1996_v0 = vcombine.high %v140_v36, %v144_v37  ;;  %v2299_v36 = vld [vmem:[#allocation7 + $0xf4] ss:$8 sps:$4 sm:$0xff]  }
  0x75   :  { %v2302_v37 = vld [vmem:[#allocation7 + $0x1f4] ss:$8 sps:$4 sm:$0xff]  }
  0x76   :  { %624 = vmatpush1.bf16.msra.mxu0 %v2017_v22  ;;  %665 = vmatpush1.bf16.msra.mxu1 %v2019_v23  ;;  %v2278_v22 = vld [vmem:[#allocation7 + $0x134] ss:$8 sps:$4 sm:$0xff]   ;;  %v2276_v23 = vld [vmem:[#allocation7 + $0x130] ss:$8 sps:$4 sm:$0xff]  }
  0x77   :  { %625 = vmatprep.subr.bf16.mxu0 %v2010_v24  ;;  %666 = vmatprep.subr.bf16.mxu1 %v2012_v26  ;;  %v2281_v24 = vld [vmem:[#allocation7 + $0x24] ss:$8 sps:$4 sm:$0xff]   ;;  %v2279_v26 = vld [vmem:[#allocation7 + $0x20] ss:$8 sps:$4 sm:$0xff]  }
  0x7a   :  { %626 = vmatpush1.bf16.msra.mxu0 %v2009_v30  ;;  %667 = vmatpush1.bf16.msra.mxu1 %v2011_v31  ;;  %v2285_v30 = vld [vmem:[#allocation7 + $0x10] ss:$8 sps:$4 sm:$0xff]  }
  0x7b   :  { %627 = vmatprep.subr.bf16.mxu0 %v2002_v32  ;;  %668 = vmatprep.subr.bf16.mxu1 %v2004_v34  ;;  %v2288_v31 = vld [vmem:[#allocation7 + $0x110] ss:$8 sps:$4 sm:$0xff]   ;;  %v2293_v32 = vld [vmem:[#allocation7 + $0x4] ss:$8 sps:$4 sm:$0xff]   ;;  %v2291_v34 = vld [vmem:[#allocation7] ss:$8 sps:$4 sm:$0xff]  }
  0x7e   :  { %628 = vmatpush1.bf16.msra.mxu0 %v2001_v38  ;;  %669 = vmatpush1.bf16.msra.mxu1 %v2003_v39  ;;  %v2297_v38 = vld [vmem:[#allocation7 + $0xf0] ss:$8 sps:$4 sm:$0xff]  }
  0x7f   :  { %629 = vmatprep.subr.bf16.mxu0 %v1994_v40  ;;  %670 = vmatprep.subr.bf16.mxu1 %v1996_v0  ;;  %v2300_v39 = vld [vmem:[#allocation7 + $0x1f0] ss:$8 sps:$4 sm:$0xff]   ;;  %v2305_v40 = vld [vmem:[#allocation7 + $0xe4] ss:$8 sps:$4 sm:$0xff]   ;;  %v2303_v0 = vld [vmem:[#allocation7 + $0xe0] ss:$8 sps:$4 sm:$0xff]  }
  0x82   :  { %630 = vmatpush1.bf16.msra.mxu0 %v1993_v45  ;;  %671 = vmatpush1.bf16.msra.mxu1 %v1995_v46  ;;  %v2309_v45 = vld [vmem:[#allocation7 + $0xd0] ss:$8 sps:$4 sm:$0xff]  }
  0x83   :  { %631 = vmatprep.subr.bf16.mxu0 %v1986_v47  ;;  %672 = vmatprep.subr.bf16.mxu1 %v1988_v49  ;;  %v2312_v46 = vld [vmem:[#allocation7 + $0x1d0] ss:$8 sps:$4 sm:$0xff]   ;;  %v2317_v47 = vld [vmem:[#allocation7 + $0xc4] ss:$8 sps:$4 sm:$0xff]   ;;  %v2315_v49 = vld [vmem:[#allocation7 + $0xc0] ss:$8 sps:$4 sm:$0xff]  }
  0x86   :  { %632 = vmatpush1.bf16.msra.mxu0 %v1985_v53  ;;  %673 = vmatpush1.bf16.msra.mxu1 %v1987_v54  ;;  %v2321_v53 = vld [vmem:[#allocation7 + $0xb0] ss:$8 sps:$4 sm:$0xff]  }
  0x87   :  { %633 = vmatprep.subr.bf16.mxu0 %v1978_v55  ;;  %674 = vmatprep.subr.bf16.mxu1 %v1980_v57  ;;  %v2324_v54 = vld [vmem:[#allocation7 + $0x1b0] ss:$8 sps:$4 sm:$0xff]   ;;  %v2329_v55 = vld [vmem:[#allocation7 + $0xa4] ss:$8 sps:$4 sm:$0xff]   ;;  %v2327_v57 = vld [vmem:[#allocation7 + $0xa0] ss:$8 sps:$4 sm:$0xff]  }
  0x8a   :  { %634 = vmatpush1.bf16.msra.mxu0 %v1977_v61  ;;  %675 = vmatpush1.bf16.msra.mxu1 %v1979_v62  ;;  %v2333_v61 = vld [vmem:[#allocation7 + $0x90] ss:$8 sps:$4 sm:$0xff]  }
  0x8b   :  { %635 = vmatprep.subr.bf16.mxu0 %v1970_v63  ;;  %676 = vmatprep.subr.bf16.mxu1 %v1972_v1  ;;  %v2336_v62 = vld [vmem:[#allocation7 + $0x190] ss:$8 sps:$4 sm:$0xff]   ;;  %v2341_v63 = vld [vmem:[#allocation7 + $0x84] ss:$8 sps:$4 sm:$0xff]  }
  0x8c   :  { %v2344_v1 = vld [vmem:[#allocation7 + $0x184] ss:$8 sps:$4 sm:$0xff]  }
  0x8e   :  { %636 = vmatpush1.bf16.msra.mxu0 %v1969_v3  ;;  %677 = vmatpush1.bf16.msra.mxu1 %v1971_v5  ;;  %v2342_v3 = vld [vmem:[#allocation7 + $0x180] ss:$8 sps:$4 sm:$0xff]   ;;  %v2350_v5 = vld [vmem:[#allocation7 + $0x374] ss:$8 sps:$4 sm:$0xff]  }
  0x8f   :  { %1499 = vmatprep.subr.bf16.mxu0 %v2251_v2  ;;  %1540 = vmatprep.subr.bf16.mxu1 %v2254_v4  ;;  %v2339_v2 = vld [vmem:[#allocation7 + $0x80] ss:$8 sps:$4 sm:$0xff]   ;;  %v2347_v4 = vld [vmem:[#allocation7 + $0x274] ss:$8 sps:$4 sm:$0xff]  }
  0x91   :  { %654 = vmatmul.mubr.bf16.vlgmr.msra.gmra.mxu0 %v2678_v12  ;;  %695 = vmatmul.mubr.bf16.vlgmr.msra.gmra.mxu1 %v2678_v12  ;;  %v2273_v12 = vld [vmem:[#allocation7 + $0x30] ss:$8 sps:$4 sm:$0xff]  }
  0x92   :  { %1500 = vmatpush1.bf16.msra.mxu0 %v2249_v6  ;;  %1541 = vmatpush1.bf16.msra.mxu1 %v2252_v7  ;;  %v179_v6 = vlaneseq }
  0x93   :  { %1501 = vmatprep.subr.bf16.mxu0 %v2257_v8  ;;  %1542 = vmatprep.subr.bf16.mxu1 %v2260_v9  ;;  %v2689_v9 = vld [vmem:[#allocation6] sm:$0xff] }
  0x94   :  { %v2686_v7 = vshrl.u32 %v179_v6, 7 }
  0x96   :  { %1502 = vmatpush1.bf16.msra.mxu0 %v2255_v10  ;;  %1543 = vmatpush1.bf16.msra.mxu1 %v2258_v11  ;;  %v181_v8 = vsub.s32 0, %v2686_v7  ;;  %v189_v10 = vsub.s32 2, %v2686_v7  ;;  %v185_v11 = vsub.s32 1, %v2686_v7 }
  0x97   :  { %1503 = vmatprep.subr.bf16.mxu0 %v2263_v13  ;;  %1544 = vmatprep.subr.bf16.mxu1 %v2266_v14  ;;  %v193_v13 = vsub.s32 3, %v2686_v7 }
  0x98   :  { %v182_v14 = vrot.slane %v2689_v9, %v181_v8 }
  0x9a   :  { %1504 = vmatpush1.bf16.msra.mxu0 %v2261_v15  ;;  %1545 = vmatpush1.bf16.msra.mxu1 %v2264_v16  ;;  %v190_v15 = vrot.slane %v2689_v9, %v189_v10  ;;  %v186_v16 = vrot.slane %v2689_v9, %v185_v11 }
  0x9b   :  { %1505 = vmatprep.subr.bf16.mxu0 %v2269_v17  ;;  %1546 = vmatprep.subr.bf16.mxu1 %v2272_v18  ;;  %v194_v18 = vrot.slane %v2689_v9, %v193_v13  ;;  %v2387_v13 = vld [vmem:[#allocation7 + $0x200] ss:$8 sps:$4 sm:$0xff]  }
  0x9e   :  { %1506 = vmatpush1.bf16.msra.mxu0 %v2267_v19  ;;  %1547 = vmatpush1.bf16.msra.mxu1 %v2270_v20 }
  0x9f   :  { %1507 = vmatprep.subr.bf16.mxu0 %v2275_v21  ;;  %1548 = vmatprep.subr.bf16.mxu1 %v2278_v22 }
  0xa2   :  { %1508 = vmatpush1.bf16.msra.mxu0 %v2273_v12  ;;  %1549 = vmatpush1.bf16.msra.mxu1 %v2276_v23 }
  0xa3   :  { %1509 = vmatprep.subr.bf16.mxu0 %v2281_v24  ;;  %1550 = vmatprep.subr.bf16.mxu1 %v2284_v25 }
  0xa6   :  { %1510 = vmatpush1.bf16.msra.mxu0 %v2279_v26  ;;  %1551 = vmatpush1.bf16.msra.mxu1 %v2282_v27 }
  0xa7   :  { %1511 = vmatprep.subr.bf16.mxu0 %v2287_v28  ;;  %1552 = vmatprep.subr.bf16.mxu1 %v2290_v29 }
  0xaa   :  { %1512 = vmatpush1.bf16.msra.mxu0 %v2285_v30  ;;  %1553 = vmatpush1.bf16.msra.mxu1 %v2288_v31 }
  0xab   :  { %1513 = vmatprep.subr.bf16.mxu0 %v2293_v32  ;;  %1554 = vmatprep.subr.bf16.mxu1 %v2296_v33 }
  0xae   :  { %1514 = vmatpush1.bf16.msra.mxu0 %v2291_v34  ;;  %1555 = vmatpush1.bf16.msra.mxu1 %v2294_v35  ;;  %v2345_v35 = vld [vmem:[#allocation7 + $0x270] ss:$8 sps:$4 sm:$0xff]  }
  0xaf   :  { %1515 = vmatprep.subr.bf16.mxu0 %v2299_v36  ;;  %1556 = vmatprep.subr.bf16.mxu1 %v2302_v37 }
  0xb2   :  { %1516 = vmatpush2.bf16.msra.mxu0 %v2297_v38  ;;  %1557 = vmatpush2.bf16.msra.mxu1 %v2300_v39  ;;  %v2348_v38 = vld [vmem:[#allocation7 + $0x370] ss:$8 sps:$4 sm:$0xff]   ;;  %v2353_v39 = vld [vmem:[#allocation7 + $0x264] ss:$8 sps:$4 sm:$0xff]  }
  0xb3   :  { %1517 = vmatprep.subr.bf16.mxu0 %v2305_v40  ;;  %1558 = vmatprep.subr.bf16.mxu1 %v2308_v41  ;;  %v2356_v40 = vld [vmem:[#allocation7 + $0x364] ss:$8 sps:$4 sm:$0xff]   ;;  %v2351_v41 = vld [vmem:[#allocation7 + $0x260] ss:$8 sps:$4 sm:$0xff]  }
  0xb6   :  { %1518 = vmatpush2.bf16.msra.mxu0 %v2303_v0  ;;  %1559 = vmatpush2.bf16.msra.mxu1 %v2306_v42  ;;  %v2354_v0 = vld [vmem:[#allocation7 + $0x360] ss:$8 sps:$4 sm:$0xff]   ;;  %v2359_v42 = vld [vmem:[#allocation7 + $0x254] ss:$8 sps:$4 sm:$0xff]  }
  0xb7   :  { %1519 = vmatprep.subr.bf16.mxu0 %v2311_v43  ;;  %1560 = vmatprep.subr.bf16.mxu1 %v2314_v44  ;;  %v2362_v43 = vld [vmem:[#allocation7 + $0x354] ss:$8 sps:$4 sm:$0xff]   ;;  %v2357_v44 = vld [vmem:[#allocation7 + $0x250] ss:$8 sps:$4 sm:$0xff]  }
  0xba   :  { %1520 = vmatpush2.bf16.msra.mxu0 %v2309_v45  ;;  %1561 = vmatpush2.bf16.msra.mxu1 %v2312_v46  ;;  %v2360_v45 = vld [vmem:[#allocation7 + $0x350] ss:$8 sps:$4 sm:$0xff]   ;;  %v2365_v46 = vld [vmem:[#allocation7 + $0x244] ss:$8 sps:$4 sm:$0xff]  }
  0xbb   :  { %1521 = vmatprep.subr.bf16.mxu0 %v2317_v47  ;;  %1562 = vmatprep.subr.bf16.mxu1 %v2320_v48  ;;  %v2368_v47 = vld [vmem:[#allocation7 + $0x344] ss:$8 sps:$4 sm:$0xff]   ;;  %v2363_v48 = vld [vmem:[#allocation7 + $0x240] ss:$8 sps:$4 sm:$0xff]  }
  0xbe   :  { %1522 = vmatpush2.bf16.msra.mxu0 %v2315_v49  ;;  %1563 = vmatpush2.bf16.msra.mxu1 %v2318_v50  ;;  %v2366_v49 = vld [vmem:[#allocation7 + $0x340] ss:$8 sps:$4 sm:$0xff]   ;;  %v2371_v50 = vld [vmem:[#allocation7 + $0x234] ss:$8 sps:$4 sm:$0xff]  }
  0xbf   :  { %1523 = vmatprep.subr.bf16.mxu0 %v2323_v51  ;;  %1564 = vmatprep.subr.bf16.mxu1 %v2326_v52  ;;  %v2374_v51 = vld [vmem:[#allocation7 + $0x334] ss:$8 sps:$4 sm:$0xff]   ;;  %v2369_v52 = vld [vmem:[#allocation7 + $0x230] ss:$8 sps:$4 sm:$0xff]  }
  0xc2   :  { %1524 = vmatpush2.bf16.msra.mxu0 %v2321_v53  ;;  %1565 = vmatpush2.bf16.msra.mxu1 %v2324_v54  ;;  %v2372_v53 = vld [vmem:[#allocation7 + $0x330] ss:$8 sps:$4 sm:$0xff]   ;;  %v2377_v54 = vld [vmem:[#allocation7 + $0x224] ss:$8 sps:$4 sm:$0xff]  }
  0xc3   :  { %1525 = vmatprep.subr.bf16.mxu0 %v2329_v55  ;;  %1566 = vmatprep.subr.bf16.mxu1 %v2332_v56  ;;  %v2380_v55 = vld [vmem:[#allocation7 + $0x324] ss:$8 sps:$4 sm:$0xff]   ;;  %v2375_v56 = vld [vmem:[#allocation7 + $0x220] ss:$8 sps:$4 sm:$0xff]  }
  0xc6   :  { %1526 = vmatpush2.bf16.msra.mxu0 %v2327_v57  ;;  %1567 = vmatpush2.bf16.msra.mxu1 %v2330_v58  ;;  %v201_v57 = vsub.s32 5, %v2686_v7  ;;  %v2378_v58 = vld [vmem:[#allocation7 + $0x320] ss:$8 sps:$4 sm:$0xff]  }
  0xc7   :  { %1527 = vmatprep.subr.bf16.mxu0 %v2335_v59  ;;  %1568 = vmatprep.subr.bf16.mxu1 %v2338_v60  ;;  %v2383_v59 = vld [vmem:[#allocation7 + $0x214] ss:$8 sps:$4 sm:$0xff]   ;;  %v209_v60 = vsub.s32 7, %v2686_v7 }
  0xca   :  { %1528 = vmatpush2.bf16.msra.mxu0 %v2333_v61  ;;  %1569 = vmatpush2.bf16.msra.mxu1 %v2336_v62  ;;  %v2386_v61 = vld [vmem:[#allocation7 + $0x314] ss:$8 sps:$4 sm:$0xff]   ;;  %v2381_v62 = vld [vmem:[#allocation7 + $0x210] ss:$8 sps:$4 sm:$0xff]  }
  0xcb   :  { %1529 = vmatprep.subr.bf16.mxu0 %v2341_v63  ;;  %1570 = vmatprep.subr.bf16.mxu1 %v2344_v1  ;;  %v202_v63 = vrot.slane %v2689_v9, %v201_v57  ;;  %v2384_v1 = vld [vmem:[#allocation7 + $0x310] ss:$8 sps:$4 sm:$0xff]  }
  0xcc   :  { %v2432_v57 = vld [vmem:[#allocation7 + $0x390] ss:$8 sps:$4 sm:$0xff]  }
  0xce   :  { %1530 = vmatpush2.bf16.msra.mxu0 %v2339_v2  ;;  %1571 = vmatpush2.bf16.msra.mxu1 %v2342_v3  ;;  %v2389_v2 = vld [vmem:[#allocation7 + $0x204] ss:$8 sps:$4 sm:$0xff]  }
  0xcf   :  { %1581 = vmatprep.subr.bf16.mxu0 %v2347_v4  ;;  %1622 = vmatprep.subr.bf16.mxu1 %v2350_v5  ;;  %v210_v4 = vrot.slane %v2689_v9, %v209_v60  ;;  %v2392_v5 = vld [vmem:[#allocation7 + $0x304] ss:$8 sps:$4 sm:$0xff]  }
 0x131   :  { %v573_v17 = vpop.f32.mrf.mxu0  ;;  %v614_v20 = vpop.f32.mrf.mxu1 }
 0x132   :  { %v574_v19 = vadd.f32 %v573_v17, %v182_v14  ;;  %v615_v21 = vadd.f32 %v614_v20, %v190_v15  ;;  %v2395_v17 = vld [vmem:[#allocation7 + $0x2f4] ss:$8 sps:$4 sm:$0xff]  }
 0x133   :  { %v575_v22 = vpop.f32.mrf.mxu0  ;;  %v616_v23 = vpop.f32.mrf.mxu1  ;;  %v2398_v20 = vld [vmem:[#allocation7 + $0x3f4] ss:$8 sps:$4 sm:$0xff]  }
 0x134   :  { %v576_v12 = vadd.f32 %v575_v22, %v186_v16  ;;  %v703_v24 = vmax.f32 %v574_v19, 0.0  ;;  %v705_v25 = vmax.f32 %v615_v21, 0.0  ;;  %v617_v26 = vadd.f32 %v616_v23, %v194_v18  ;;  %v2390_v16 = vld [vmem:[#allocation7 + $0x300] ss:$8 sps:$4 sm:$0xff]  }
 0x135   :  { %v577_v27 = vpop.f32.mrf.mxu0  ;;  %v618_v29 = vpop.f32.mrf.mxu1 }
 0x136   :  { %v704_v28 = vmax.f32 %v576_v12, 0.0  ;;  %v706_v30 = vmax.f32 %v617_v26, 0.0  ;;  %v713_v32 = vpack.c.bf16 %v705_v25, %v705_v25  ;;  %v711_v36 = vpack.c.bf16 %v703_v24, %v703_v24  ;;  %v2393_v24 = vld [vmem:[#allocation7 + $0x2f0] ss:$8 sps:$4 sm:$0xff]  }
 0x137   :  { %v578_v31 = vpop.f32.mrf.mxu0  ;;  %v619_v34 = vpop.f32.mrf.mxu1  ;;  %v2396_v27 = vld [vmem:[#allocation7 + $0x3f0] ss:$8 sps:$4 sm:$0xff]  }
 0x138   :  { %v712_v33 = vpack.c.bf16 %v704_v28, %v704_v28  ;;  %v714_v37 = vpack.c.bf16 %v706_v30, %v706_v30  ;;  %v2401_v28 = vld [vmem:[#allocation7 + $0x2e4] ss:$8 sps:$4 sm:$0xff]   ;;  %v2399_v31 = vld [vmem:[#allocation7 + $0x2e0] ss:$8 sps:$4 sm:$0xff]   ;;  %v2410_v34 = vld [vmem:[#allocation7 + $0x3d4] ss:$8 sps:$4 sm:$0xff]  }
 0x139   :  { %v2404_v30 = vld [vmem:[#allocation7 + $0x3e4] ss:$8 sps:$4 sm:$0xff]  }
 0x13a   :  { %1531 = vmatprep.mubr.bf16.mxu0 %v712_v33  ;;  %1572 = vmatprep.mubr.bf16.mxu1 %v714_v37  ;;  %v2407_v33 = vld [vmem:[#allocation7 + $0x2d4] ss:$8 sps:$4 sm:$0xff]   ;;  %v2413_v37 = vld [vmem:[#allocation7 + $0x2c4] ss:$8 sps:$4 sm:$0xff]  }
 0x13b   :  { %1532 = vmatmul.mubr.bf16.vlgmr.msra.gmra.mxu0 %v711_v36  ;;  %1573 = vmatmul.mubr.bf16.vlgmr.msra.gmra.mxu1 %v713_v32  ;;  %v2402_v32 = vld [vmem:[#allocation7 + $0x3e0] ss:$8 sps:$4 sm:$0xff]   ;;  %v2408_v36 = vld [vmem:[#allocation7 + $0x3d0] ss:$8 sps:$4 sm:$0xff]  }
 0x13c   :  { %1582 = vmatpush1.bf16.msra.mxu0 %v2345_v35  ;;  %1623 = vmatpush1.bf16.msra.mxu1 %v2348_v38  ;;  %v2405_v35 = vld [vmem:[#allocation7 + $0x2d0] ss:$8 sps:$4 sm:$0xff]   ;;  %v2416_v38 = vld [vmem:[#allocation7 + $0x3c4] ss:$8 sps:$4 sm:$0xff]  }
 0x13d   :  { %1583 = vmatprep.subr.bf16.mxu0 %v2353_v39  ;;  %1624 = vmatprep.subr.bf16.mxu1 %v2356_v40  ;;  %v2411_v39 = vld [vmem:[#allocation7 + $0x2c0] ss:$8 sps:$4 sm:$0xff]  }
 0x13e   :  { %v2414_v40 = vld [vmem:[#allocation7 + $0x3c0] ss:$8 sps:$4 sm:$0xff]  }
 0x140   :  { %1584 = vmatpush1.bf16.msra.mxu0 %v2351_v41  ;;  %1625 = vmatpush1.bf16.msra.mxu1 %v2354_v0  ;;  %v2419_v41 = vld [vmem:[#allocation7 + $0x2b4] ss:$8 sps:$4 sm:$0xff]  }
 0x141   :  { %1585 = vmatprep.subr.bf16.mxu0 %v2359_v42  ;;  %1626 = vmatprep.subr.bf16.mxu1 %v2362_v43  ;;  %v2422_v0 = vld [vmem:[#allocation7 + $0x3b4] ss:$8 sps:$4 sm:$0xff]   ;;  %v2417_v42 = vld [vmem:[#allocation7 + $0x2b0] ss:$8 sps:$4 sm:$0xff]   ;;  %v205_v43 = vsub.s32 6, %v2686_v7 }
 0x144   :  { %1586 = vmatpush1.bf16.msra.mxu0 %v2357_v44  ;;  %1627 = vmatpush1.bf16.msra.mxu1 %v2360_v45  ;;  %v197_v44 = vsub.s32 4, %v2686_v7  ;;  %v2420_v45 = vld [vmem:[#allocation7 + $0x3b0] ss:$8 sps:$4 sm:$0xff]  }
 0x145   :  { %1587 = vmatprep.subr.bf16.mxu0 %v2365_v46  ;;  %1628 = vmatprep.subr.bf16.mxu1 %v2368_v47  ;;  %v2425_v46 = vld [vmem:[#allocation7 + $0x2a4] ss:$8 sps:$4 sm:$0xff]  }
 0x146   :  { %v2428_v47 = vld [vmem:[#allocation7 + $0x3a4] ss:$8 sps:$4 sm:$0xff]  }
 0x148   :  { %1588 = vmatpush1.bf16.msra.mxu0 %v2363_v48  ;;  %1629 = vmatpush1.bf16.msra.mxu1 %v2366_v49  ;;  %v206_v48 = vrot.slane %v2689_v9, %v205_v43  ;;  %v2423_v49 = vld [vmem:[#allocation7 + $0x2a0] ss:$8 sps:$4 sm:$0xff]  }
 0x149   :  { %1589 = vmatprep.subr.bf16.mxu0 %v2371_v50  ;;  %1630 = vmatprep.subr.bf16.mxu1 %v2374_v51  ;;  %v198_v50 = vrot.slane %v2689_v9, %v197_v44  ;;  %v2426_v51 = vld [vmem:[#allocation7 + $0x3a0] ss:$8 sps:$4 sm:$0xff]  }
 0x14a   :  { %v2435_v9 = vld [vmem:[#allocation7 + $0x280] ss:$8 sps:$4 sm:$0xff]  }
 0x14c   :  { %1590 = vmatpush1.bf16.msra.mxu0 %v2369_v52  ;;  %1631 = vmatpush1.bf16.msra.mxu1 %v2372_v53  ;;  %v2431_v52 = vld [vmem:[#allocation7 + $0x294] ss:$8 sps:$4 sm:$0xff]  }
 0x14d   :  { %1591 = vmatprep.subr.bf16.mxu0 %v2377_v54  ;;  %1632 = vmatprep.subr.bf16.mxu1 %v2380_v55  ;;  %v2434_v53 = vld [vmem:[#allocation7 + $0x394] ss:$8 sps:$4 sm:$0xff]   ;;  %v2429_v55 = vld [vmem:[#allocation7 + $0x290] ss:$8 sps:$4 sm:$0xff]  }
 0x150   :  { %1592 = vmatpush1.bf16.msra.mxu0 %v2375_v56  ;;  %1633 = vmatpush1.bf16.msra.mxu1 %v2378_v58  ;;  %v2437_v58 = vld [vmem:[#allocation7 + $0x284] ss:$8 sps:$4 sm:$0xff]  }
 0x151   :  { %1593 = vmatprep.subr.bf16.mxu0 %v2383_v59  ;;  %v2705_v3 = vpop.f32.mrf.mxu0  ;;  %1634 = vmatprep.subr.bf16.mxu1 %v2386_v61  ;;  %v2708_v6 = vpop.f32.mrf.mxu1  ;;  %v2440_v59 = vld [vmem:[#allocation7 + $0x384] ss:$8 sps:$4 sm:$0xff]  }
 0x152   :  { %v697_v54 = vadd.f32 %v2708_v6, %v206_v48  ;;  %v656_v56 = vadd.f32 %v2705_v3, %v198_v50  ;;  %v2442_v3 = vld [vmem:[#allocation9 + $0x38] sm:$0xff]   ;;  %v2445_v6 = vld [vmem:[#allocation9 + $0x68] sm:$0xff]  }
 0x153   :  { %v657_v10 = vpop.f32.mrf.mxu0  ;;  %v698_v15 = vpop.f32.mrf.mxu1 }
 0x154   :  { %1594 = vmatpush1.bf16.msra.mxu0 %v2381_v62  ;;  %v658_v14 = vadd.f32 %v657_v10, %v202_v63  ;;  %1635 = vmatpush1.bf16.msra.mxu1 %v2384_v1  ;;  %v699_v19 = vadd.f32 %v698_v15, %v210_v4  ;;  %v709_v60 = vmax.f32 %v697_v54, 0.0  ;;  %v707_v61 = vmax.f32 %v656_v56, 0.0  ;;  %v2438_v62 = vld [vmem:[#allocation7 + $0x380] ss:$8 sps:$4 sm:$0xff]   ;;  %v2443_v4 = vld [vmem:[#allocation9 + $0x70] sm:$0xff]   ;;  %v2449_v15 = vld [vmem:[#allocation9 + $0x58] sm:$0xff]  }
 0x155   :  { %1595 = vmatprep.subr.bf16.mxu0 %v2389_v2  ;;  %v659_v18 = vpop.f32.mrf.mxu0  ;;  %1636 = vmatprep.subr.bf16.mxu1 %v2392_v5  ;;  %v700_v22 = vpop.f32.mrf.mxu1  ;;  %v2441_v2 = vld [vmem:[#allocation9 + $0x78] sm:$0xff]   ;;  %v2444_v5 = vld [vmem:[#allocation9 + $0x30] sm:$0xff]   ;;  %v2446_v10 = vld [vmem:[#allocation9 + $0x28] sm:$0xff]  }
 0x156   :  { %v708_v21 = vmax.f32 %v658_v14, 0.0  ;;  %v710_v12 = vmax.f32 %v699_v19, 0.0  ;;  %v717_v63 = vpack.c.bf16 %v709_v60, %v709_v60  ;;  %v715_v1 = vpack.c.bf16 %v707_v61, %v707_v61  ;;  %v2448_v14 = vld [vmem:[#allocation9 + $0x20] sm:$0xff]   ;;  %v2452_v18 = vld [vmem:[#allocation9 + $0x10] sm:$0xff]   ;;  %v2453_v19 = vld [vmem:[#allocation9 + $0x48] sm:$0xff]  }
 0x157   :  { %v660_v23 = vpop.f32.mrf.mxu0  ;;  %v701_v26 = vpop.f32.mrf.mxu1  ;;  %v2456_v22 = vld [vmem:[#allocation9] sm:$0xff]   ;;  %v2463_v56 = vld [vmem:[#allocation10 + $0x8] sm:$0xff]  }
 0x158   :  { %1596 = vmatpush1.bf16.msra.mxu0 %v2387_v13  ;;  %v716_v25 = vpack.c.bf16 %v708_v21, %v708_v21  ;;  %1637 = vmatpush1.bf16.msra.mxu1 %v2390_v16  ;;  %v718_v29 = vpack.c.bf16 %v710_v12, %v710_v12  ;;  %v2447_v13 = vld [vmem:[#allocation9 + $0x60] sm:$0xff]   ;;  %v2450_v16 = vld [vmem:[#allocation9 + $0x18] sm:$0xff]   ;;  %v2606_v23 = vmov 0.0  }
 0x159   :  { %1597 = vmatprep.subr.bf16.mxu0 %v2395_v17  ;;  %1638 = vmatprep.subr.bf16.mxu1 %v2398_v20  ;;  %v2451_v17 = vld [vmem:[#allocation9 + $0x50] sm:$0xff]   ;;  %v2454_v20 = vld [vmem:[#allocation9 + $0x8] sm:$0xff]   ;;  %v2455_v21 = vld [vmem:[#allocation9 + $0x40] sm:$0xff]  }
 0x15a   :  { %1613 = vmatprep.mubr.bf16.mxu0 %v716_v25  ;;  %1654 = vmatprep.mubr.bf16.mxu1 %v718_v29  ;;  %v2457_v12 = vld [vmem:[#allocation10 + $0x38] sm:$0xff]   ;;  %v2459_v25 = vld [vmem:[#allocation10 + $0x28] sm:$0xff]   ;;  %v2460_v26 = vld [vmem:[#allocation10 + $0x20] sm:$0xff]  }
 0x15c   :  { %1598 = vmatpush2.bf16.msra.mxu0 %v2393_v24  ;;  %1639 = vmatpush2.bf16.msra.mxu1 %v2396_v27  ;;  %v2458_v24 = vld [vmem:[#allocation10 + $0x30] sm:$0xff]   ;;  %v2461_v27 = vld [vmem:[#allocation10 + $0x18] sm:$0xff]  }
 0x15d   :  { %1599 = vmatprep.subr.bf16.mxu0 %v2401_v28  ;;  %1640 = vmatprep.subr.bf16.mxu1 %v2404_v30 }
 0x160   :  { %1600 = vmatpush2.bf16.msra.mxu0 %v2399_v31  ;;  %1641 = vmatpush2.bf16.msra.mxu1 %v2402_v32 }
 0x161   :  { %1601 = vmatprep.subr.bf16.mxu0 %v2407_v33  ;;  %1642 = vmatprep.subr.bf16.mxu1 %v2410_v34 }
 0x164   :  { %1602 = vmatpush2.bf16.msra.mxu0 %v2405_v35  ;;  %1643 = vmatpush2.bf16.msra.mxu1 %v2408_v36  ;;  %v847_v36 = vld [vmem:[%s2736_s4] sm:$0x3] }
 0x165   :  { %1603 = vmatprep.subr.bf16.mxu0 %v2413_v37  ;;  %1644 = vmatprep.subr.bf16.mxu1 %v2416_v38  ;;  %v852_v37 = vrot.slane %v847_v36, %v181_v8  ;;  %v856_v38 = vrot.slane %v847_v36, %v185_v11 }
 0x168   :  { %1604 = vmatpush2.bf16.msra.mxu0 %v2411_v39  ;;  %1645 = vmatpush2.bf16.msra.mxu1 %v2414_v40 }
 0x169   :  { %1605 = vmatprep.subr.bf16.mxu0 %v2419_v41  ;;  %1646 = vmatprep.subr.bf16.mxu1 %v2422_v0 }
 0x16c   :  { %1606 = vmatpush2.bf16.msra.mxu0 %v2417_v42  ;;  %1647 = vmatpush2.bf16.msra.mxu1 %v2420_v45 }
 0x16d   :  { %1607 = vmatprep.subr.bf16.mxu0 %v2425_v46  ;;  %1648 = vmatprep.subr.bf16.mxu1 %v2428_v47 }
 0x170   :  { %1608 = vmatpush2.bf16.msra.mxu0 %v2423_v49  ;;  %1649 = vmatpush2.bf16.msra.mxu1 %v2426_v51 }
 0x171   :  { %1609 = vmatprep.subr.bf16.mxu0 %v2431_v52  ;;  %1650 = vmatprep.subr.bf16.mxu1 %v2434_v53 }
 0x174   :  { %1610 = vmatpush2.bf16.msra.mxu0 %v2429_v55  ;;  %1651 = vmatpush2.bf16.msra.mxu1 %v2432_v57  ;;  %v2462_v55 = vld [vmem:[#allocation10 + $0x10] sm:$0xff]   ;;  %v2464_v57 = vld [vmem:[#allocation10] sm:$0xff]  }
 0x175   :  { %1611 = vmatprep.subr.bf16.mxu0 %v2437_v58  ;;  %1652 = vmatprep.subr.bf16.mxu1 %v2440_v59  ;;  %v2157_v59 = vld [vmem:[%s2738_s6] ss:$0 sm:$0xff] }
 0x178   :  { %1612 = vmatpush2.bf16.msra.mxu0 %v2435_v9  ;;  %1653 = vmatpush2.bf16.msra.mxu1 %v2438_v62 }
 0x179   :  { %2183 = vmatprep.subr.bf16.mxu0 %v2441_v2  ;;  %2214 = vmatprep.subr.bf16.mxu1 %v2606_v23 }
 0x17b   :  { %1614 = vmatmul.mubr.bf16.vlgmr.msra.gmra.mxu0 %v715_v1  ;;  %1655 = vmatmul.mubr.bf16.vlgmr.msra.gmra.mxu1 %v717_v63 }
 0x17c   :  { %2184 = vmatpush3.bf16.msra.mxu0 %v2442_v3  ;;  %2215 = vmatpush3.bf16.msra.mxu1 %v2457_v12  ;;  %v2174_v3 = vld [vmem:[%s2740_s8] ss:$0 sm:$0xff] }
 0x17d   :  { %2185 = vmatprep.subr.bf16.mxu0 %v2443_v4  ;;  %2216 = vmatprep.subr.bf16.mxu1 %v2606_v23 }
 0x17e   :  { %2230 = vmatprep.mubr.msk.bf16.mxu1 %vm2607_vm0, %v2606_v23 }
 0x180   :  { %2186 = vmatpush3.bf16.msra.mxu0 %v2444_v5  ;;  %2217 = vmatpush3.bf16.msra.mxu1 %v2458_v24 }
 0x181   :  { %2187 = vmatprep.subr.bf16.mxu0 %v2445_v6  ;;  %2218 = vmatprep.subr.bf16.mxu1 %v2606_v23 }
 0x184   :  { %2188 = vmatpush3.bf16.msra.mxu0 %v2446_v10  ;;  %2219 = vmatpush3.bf16.msra.mxu1 %v2459_v25 }
 0x185   :  { %2189 = vmatprep.subr.bf16.mxu0 %v2447_v13  ;;  %2220 = vmatprep.subr.bf16.mxu1 %v2606_v23 }
 0x188   :  { %2190 = vmatpush3.bf16.msra.mxu0 %v2448_v14  ;;  %2221 = vmatpush3.bf16.msra.mxu1 %v2460_v26 }
 0x189   :  { %2191 = vmatprep.subr.bf16.mxu0 %v2449_v15  ;;  %2222 = vmatprep.subr.bf16.mxu1 %v2606_v23 }
 0x18c   :  { %2192 = vmatpush3.bf16.msra.mxu0 %v2450_v16  ;;  %2223 = vmatpush3.bf16.msra.mxu1 %v2461_v27 }
 0x18d   :  { %2193 = vmatprep.subr.bf16.mxu0 %v2451_v17  ;;  %2224 = vmatprep.subr.bf16.mxu1 %v2606_v23 }
 0x190   :  { %2194 = vmatpush3.bf16.msra.mxu0 %v2452_v18  ;;  %2225 = vmatpush3.bf16.msra.mxu1 %v2462_v55 }
 0x191   :  { %2195 = vmatprep.subr.bf16.mxu0 %v2453_v19  ;;  %2226 = vmatprep.subr.bf16.mxu1 %v2606_v23 }
 0x194   :  { %2196 = vmatpush3.bf16.msra.mxu0 %v2454_v20  ;;  %2227 = vmatpush3.bf16.msra.mxu1 %v2463_v56 }
 0x195   :  { %2197 = vmatprep.subr.bf16.mxu0 %v2455_v21  ;;  %2228 = vmatprep.subr.bf16.mxu1 %v2606_v23 }
 0x198   :  { %2198 = vmatpush3.bf16.msra.mxu0 %v2456_v22  ;;  %2229 = vmatpush3.bf16.msra.mxu1 %v2464_v57 }
 0x1fb   :  { %v1533_v28 = vpop.f32.mrf.mxu0  ;;  %v1574_v29 = vpop.f32.mrf.mxu1 }
 0x1fc   :  { %v1534_v39 = vadd.f32 %v1533_v28, %v852_v37 }
 0x1fd   :  { %v1535_v30 = vpop.f32.mrf.mxu0  ;;  %v1576_v31 = vpop.f32.mrf.mxu1 }
 0x1fe   :  { %v1536_v40 = vadd.f32 %v1535_v30, %v856_v38  ;;  %v1575_v41 = vadd.f32 %v1574_v29, %v1534_v39 }
 0x1ff   :  { %v1537_v32 = vpop.f32.mrf.mxu0  ;;  %v1578_v33 = vpop.f32.mrf.mxu1 }
 0x200   :  { %v1577_v42 = vadd.f32 %v1576_v31, %v1536_v40 }
 0x201   :  { %v1538_v34 = vpop.f32.mrf.mxu0  ;;  %v1579_v35 = vpop.f32.mrf.mxu1 }
 0x23b   :  { %v1615_v0 = vpop.f32.mrf.mxu0  ;;  %v1656_v44 = vpop.f32.mrf.mxu1 }
 0x23c   :  { %v1616_v43 = vadd.f32 %v1615_v0, %v1575_v41 }
 0x23d   :  { %v1617_v45 = vpop.f32.mrf.mxu0  ;;  %v1658_v48 = vpop.f32.mrf.mxu1 }
 0x23e   :  { %v1657_v46 = vadd.f32 %v1656_v44, %v1616_v43  ;;  %v1618_v47 = vadd.f32 %v1617_v45, %v1577_v42 }
 0x23f   :  { %v1619_v49 = vpop.f32.mrf.mxu0  ;;  %v1660_v51 = vpop.f32.mrf.mxu1 }
 0x240   :  { %v1659_v50 = vadd.f32 %v1658_v48, %v1618_v47  ;;  %v1663_v52 = vmax.f32 %v1657_v46, 0.0 }
 0x241   :  { %v1620_v53 = vpop.f32.mrf.mxu0  ;;  %v1661_v54 = vpop.f32.mrf.mxu1 }
 0x242   :  { %v1664_v8 = vmax.f32 %v1659_v50, 0.0  ;;  %v1665_v11 = vpack.c.bf16 %v1663_v52, %v1663_v52 }
 0x244   :  { %v1666_v7 = vpack.c.bf16 %v1664_v8, %v1664_v8 }
 0x246   :  { %1834 = vmatprep.mubr.bf16.mxu0 %v1666_v7 }
 0x247   :  { %1835 = vmatmul.mubr.bf16.vlgmr.msra.gmra.mxu0 %v1665_v11 }
 0x307   :  { %v2199_v58 = vpop.f32.mrf.mxu0 }
 0x309   :  { %v2200_v60 = vpop.f32.mrf.mxu0 }
 0x30a   :  { %v2201_v9 = vadd.f32 %v2200_v60, %v2199_v58 }
 0x30b   :  { %v2202_v61 = vpop.f32.mrf.mxu0 }
 0x30c   :  { %v1837_v62 = vadd.f32 %v2201_v9, %v2157_v59 }
 0x30d   :  { %v2203_v63 = vpop.f32.mrf.mxu0 }
 0x30e   :  { %v1842_v1 = vmax.f32 %v1837_v62, 0.0 }
 0x310   :  { %v1843_v2 = vpack.c.bf16 %v1842_v1, %v1842_v1 }
 0x312   :  { %2231 = vmatmul.mubr.bf16.vlgmr.msra.gmra.mxu1 %v1843_v2 }
 0x3d2   :  { %v1949_v4 = vpop.f32.mrf.mxu1 }
 0x3d3   :  { %v1950_v5 = vadd.f32 %v2174_v3, %v1949_v4 }
 0x3d4   :  { %v2232_v6 = vpop.f32.mrf.mxu1 }
 0x3d5   :  { %1956 = vst.msk [vmem:[%s2741_s9] sm:$0xff] %vm1955_vm1, %v1950_v5 }
 0x3d6   :  { %v1952_v10 = vpop.f32.mrf.mxu1 }
 0x3d8   :  { %v2233_v13 = vpop.f32.mrf.mxu1 }
 0x3d9   :  { %1961 = vsyncpa [#allocation3], 1 }
 0x3da   :  { %1962 = vsyncpa [#allocation5], 1 }
 0x3db   :  { %1963 = vsyncpa [#allocation8], 1 }
 0x3dc   :  { %1964 = vsyncpa [#allocation11], 1 }

</bundles_post_ra>
